<compile_context>
chip_gen: v7x
topology: tpu7x:2x2x1
jax: 0.10.0
libtpu: 0.0.40
codegen_flags: <defaults>
</compile_context>

<pallas_src>
import functools
import math

import jax
import jax.numpy as jnp
from jax.experimental import pallas as pl
from jax.experimental.pallas import tpu as pltpu

LANE = 128
_SUBLANE = 8
# Per-input DMA block target (bytes). 2 inputs x 2 pipeline buffers = 16 MiB.
_TARGET_BLOCK_BYTES = 4 * 1024 * 1024
# Rows per inner compute chunk: bounds f32 temporaries independent of block.
_CHUNK_ROWS = 512
# Leading 'parallel' grid axis for v7x megacore (no-op cost on v5e/v6e).
_NUM_SLICES = 2
# Safe on all of v5e (128 MiB phys), v6e (128 MiB), v7x (64 MiB per TC).
_VMEM_LIMIT_BYTES = 32 * 1024 * 1024


def _mse_kernel(pred_ref, real_ref, out_ref, *, rows, tile, chunk,
                steps_per_slice, needs_mask):
    """Accumulate per-slice partial sums of (real - pred)^2 into an (8,128) block."""
    s = pl.program_id(0)   # parallel slice (megacore axis)
    i = pl.program_id(1)   # sequential reduction step within the slice

    @pl.when(i == 0)
    def _():
        out_ref[...] = jnp.zeros_like(out_ref)

    # Global row-block index this step covers.  It may point one past the last
    # real block when blocks don't divide evenly across slices; the index_map
    # clamps the DMA and the mask below zeroes the contribution.
    g = s * steps_per_slice + i
    base = g * tile
    num_chunks = tile // chunk   # static Python int

    def _partial(masked):
        def body(c, acc):
            r0 = pl.multiple_of(c * chunk, chunk)
            p = pred_ref[pl.ds(r0, chunk), :].astype(jnp.float32)
            r = real_ref[pl.ds(r0, chunk), :].astype(jnp.float32)
            d = r - p
            sq = d * d
            if masked:
                row_ids = (base + r0) + jax.lax.broadcasted_iota(
                    jnp.int32, sq.shape, 0)
                sq = jnp.where(row_ids < rows, sq, 0.0)
            # Fold sublane groups with pure VPU adds; the cross-sublane /
            # cross-lane reduce happens once, in the wrapper.
            return acc + sq.reshape(chunk // _SUBLANE, _SUBLANE, LANE).sum(axis=0)

        return jax.lax.fori_loop(
            0, num_chunks, body, jnp.zeros((_SUBLANE, LANE), jnp.float32))

    if needs_mask:
        # Only ragged / out-of-range blocks pay for iota+compare+select.
        is_full = (base + tile) <= rows

        @pl.when(is_full)
        def _():
            out_ref[...] += _partial(False)

        @pl.when(jnp.logical_not(is_full))
        def _():
            out_ref[...] += _partial(True)
    else:
        out_ref[...] += _partial(False)


def mse_pallas(pred, real, *, block_rows=None):
    """MSE(pred, real) = sum((real - pred)^2) / numel via a Pallas TPU kernel."""
    assert pred.shape == real.shape
    n = pred.size
    assert n > 0

    flat_p = jnp.ravel(pred)
    flat_r = jnp.ravel(real)

    itemsize_p = jnp.dtype(pred.dtype).itemsize
    itemsize_r = jnp.dtype(real.dtype).itemsize
    # Sublane-packing multiple: 8 rows (32-bit), 16 (bf16), 32 (int8/fp8).
    sub = max(_SUBLANE, 32 // min(itemsize_p, itemsize_r, 4))
    align = sub * LANE

    # Kernel handles the lane/sublane-aligned body; the tiny ragged tail
    # (< sub*128 elements) is added with plain XLA -> no whole-array jnp.pad.
    n_body = (n // align) * align
    rows = n_body // LANE

    if rows > 0:
        if block_rows is None:
            # Constant bytes-per-block across dtypes (~4 MiB per input).
            tile = _TARGET_BLOCK_BYTES // (LANE * max(itemsize_p, itemsize_r))
        else:
            tile = int(block_rows)
        tile = max(sub, (tile // sub) * sub)
        tile = min(tile, rows)
        chunk = math.gcd(tile, _CHUNK_ROWS)      # divides tile, multiple of sub

        total_blocks = pl.cdiv(rows, tile)
        num_slices = _NUM_SLICES if total_blocks >= _NUM_SLICES else 1
        steps_per_slice = pl.cdiv(total_blocks, num_slices)
        needs_mask = (rows % tile != 0) or (num_slices * steps_per_slice != total_blocks)
        last_block = total_blocks - 1

        def block_index(s, i):
            g = s * steps_per_slice + i
            # Clamp so the DMA window for the (possibly non-existent) trailing
            # block stays in bounds; its contribution is masked to zero.
            return (jnp.minimum(g, last_block), 0)

        body_p = (flat_p if n_body == n else flat_p[:n_body]).reshape(rows, LANE)
        body_r = (flat_r if n_body == n else flat_r[:n_body]).reshape(rows, LANE)

        kernel = functools.partial(
            _mse_kernel, rows=rows, tile=tile, chunk=chunk,
            steps_per_slice=steps_per_slice, needs_mask=needs_mask)

        partials = pl.pallas_call(
            kernel,
            out_shape=jax.ShapeDtypeStruct((num_slices * _SUBLANE, LANE),
                                           jnp.float32),
            grid_spec=pltpu.PrefetchScalarGridSpec(
                num_scalar_prefetch=0,
                grid=(num_slices, steps_per_slice),
                in_specs=[
                    pl.BlockSpec((tile, LANE), block_index),
                    pl.BlockSpec((tile, LANE), block_index),
                ],
                out_specs=pl.BlockSpec((_SUBLANE, LANE), lambda s, i: (s, 0)),
            ),
            compiler_params=pltpu.CompilerParams(
                dimension_semantics=("parallel", "arbitrary"),
                vmem_limit_bytes=_VMEM_LIMIT_BYTES,
            ),
            cost_estimate=pl.CostEstimate(
                flops=3 * n_body,
                transcendentals=0,
                bytes_accessed=n_body * (itemsize_p + itemsize_r)
                + num_slices * _SUBLANE * LANE * 4,
            ),
        )(body_p, body_r)
        body_sum = jnp.sum(partials)
    else:
        # TODO(synk): inputs smaller than one aligned row-group fall back to
        # plain XLA for the whole sum (tail path below covers everything).
        body_sum = jnp.float32(0.0)

    if n_body < n:
        tp = flat_p[n_body:].astype(jnp.float32)
        tr = flat_r[n_body:].astype(jnp.float32)
        td = tr - tp
        total = body_sum + jnp.sum(td * td)
    else:
        total = body_sum

    # numel is a static Python int; the scalar divide fuses for free in XLA.
    return total / n


if __name__ == "__main__":
    key = jax.random.PRNGKey(0)
    k1, k2, k3, k4, k5, k6 = jax.random.split(key, 6)

    # 1) Lane/sublane-aligned numel: pure single-block kernel path.
    pred = jax.random.normal(k1, (2, 4, 16, 16), dtype=jnp.float32)
    real = jax.random.normal(k2, (2, 4, 16, 16), dtype=jnp.float32)
    mse = mse_pallas(pred, real)
    jax.block_until_ready(mse)
    ref = jnp.mean((real - pred) ** 2)
    assert jnp.allclose(mse, ref, rtol=1e-5, atol=1e-6), (mse, ref)

    # 2) Unaligned numel: kernel body + XLA tail (no jnp.pad copies).
    p2 = jax.random.normal(k3, (3, 5, 7, 11), dtype=jnp.float32)
    r2 = jax.random.normal(k4, (3, 5, 7, 11), dtype=jnp.float32)
    mse2 = mse_pallas(p2, r2)
    jax.block_until_ready(mse2)
    ref2 = jnp.mean((r2 - p2) ** 2)
    assert jnp.allclose(mse2, ref2, rtol=1e-5, atol=1e-6), (mse2, ref2)

    # 3) Multi-block grid with small forced tiles: exercises the 2-way parallel
    #    split, the clamped out-of-range block, and the ragged last-tile mask.
    p3 = jax.random.normal(k5, (2, 3, 40, 40), dtype=jnp.float32)
    r3 = jax.random.normal(k6, (2, 3, 40, 40), dtype=jnp.float32)
    mse3 = mse_pallas(p3, r3, block_rows=16)
    jax.block_until_ready(mse3)
    ref3 = jnp.mean((r3 - p3) ** 2)
    assert jnp.allclose(mse3, ref3, rtol=1e-5, atol=1e-6), (mse3, ref3)

    print("KERNEL_OK")
</pallas_src>

<mosaic_0001>
module attributes {stable_mosaic.version = 11 : i64} {
  func.func @_mse_kernel(%arg0: i32, %arg1: i32, %arg2: memref<16x128xf32, #tpu.memory_space<vmem>>, %arg3: memref<16x128xf32, #tpu.memory_space<vmem>>, %arg4: memref<8x128xf32, #tpu.memory_space<vmem>>) attributes {dimension_semantics = [#tpu.dimension_semantics<parallel>, #tpu.dimension_semantics<arbitrary>], iteration_bounds = array<i64: 1, 1>, scalar_prefetch = 0 : i64, scratch_operands = 0 : i64, tpu.core_type = #tpu.core_type<tc>, window_params = [{transform_indices = @transform_0, window_bounds = array<i64: 16, 128>}, {transform_indices = @transform_1, window_bounds = array<i64: 16, 128>}, {transform_indices = @transform_2, window_bounds = array<i64: 8, 128>}]} {
    %c0_i32 = arith.constant 0 : i32
    %0 = arith.cmpi eq, %arg1, %c0_i32 : i32
    %1 = arith.extui %0 : i1 to i32
    %c0_i32_0 = arith.constant 0 : i32
    %2 = arith.cmpi ne, %1, %c0_i32_0 : i32
    scf.if %2 {
      %cst_8 = arith.constant 0.000000e+00 : f32
      %18 = vector.broadcast %cst_8 : f32 to vector<8x128xf32>
      %c0_9 = arith.constant 0 : index
      %c0_10 = arith.constant 0 : index
      %19 = vector.load %arg4[%c0_9, %c0_10] : memref<8x128xf32, #tpu.memory_space<vmem>>, vector<8x128xf32>
      tpu.vector_store %arg4[%c0_9, %c0_10], %18 {strides = array<i32>} : memref<8x128xf32, #tpu.memory_space<vmem>>, vector<8x128xf32>,
    } else {
    }
    %c0 = arith.constant 0 : index
    %c0_1 = arith.constant 0 : index
    %3 = vector.load %arg4[%c0, %c0_1] : memref<8x128xf32, #tpu.memory_space<vmem>>, vector<8x128xf32>
    %cst = arith.constant 0.000000e+00 : f32
    %4 = vector.broadcast %cst : f32 to vector<8x128xf32>
    %c0_i32_2 = arith.constant 0 : i32
    %c16_i32 = arith.constant 16 : i32
    %5 = arith.muli %c0_i32_2, %c16_i32 : i32
    %6 = tpu.assume_multiple %5, 16 : i32
    %7 = arith.index_cast %6 : i32 to index
    %c0_3 = arith.constant 0 : index
    %8 = vector.load %arg2[%7, %c0_3] : memref<16x128xf32, #tpu.memory_space<vmem>>, vector<16x128xf32>
    %9 = arith.index_cast %6 : i32 to index
    %c0_4 = arith.constant 0 : index
    %10 = vector.load %arg3[%9, %c0_4] : memref<16x128xf32, #tpu.memory_space<vmem>>, vector<16x128xf32>
    %11 = arith.subf %10, %8 : vector<16x128xf32>
    %12 = arith.mulf %11, %11 : vector<16x128xf32>
    %13 = vector.shape_cast %12 : vector<16x128xf32> to vector<2x8x128xf32>
    %cst_5 = arith.constant dense<0.000000e+00> : vector<8x128xf32>
    %14 = vector.multi_reduction <add>, %13, %cst_5 [0] : vector<2x8x128xf32> to vector<8x128xf32>
    %15 = arith.addf %4, %14 : vector<8x128xf32>
    %c1_i32 = arith.constant 1 : i32
    %16 = arith.addf %3, %15 : vector<8x128xf32>
    %c0_6 = arith.constant 0 : index
    %c0_7 = arith.constant 0 : index
    %17 = vector.load %arg4[%c0_6, %c0_7] : memref<8x128xf32, #tpu.memory_space<vmem>>, vector<8x128xf32>
    tpu.vector_store %arg4[%c0_6, %c0_7], %16 {strides = array<i32>} : memref<8x128xf32, #tpu.memory_space<vmem>>, vector<8x128xf32>,
    return
  }
  func.func @transform_0(%arg0: i32, %arg1: i32) -> (i32, i32) {
    %c1_i32 = arith.constant 1 : i32
    %0 = arith.muli %arg0, %c1_i32 : i32
    %1 = arith.addi %0, %arg1 : i32
    %c0_i32 = arith.constant 0 : i32
    %2 = arith.minsi %1, %c0_i32 : i32
    %c0_i32_0 = arith.constant 0 : i32
    %c0_i32_1 = arith.constant 0 : i32
    return %2, %c0_i32_0 : i32, i32
  }
  func.func @transform_1(%arg0: i32, %arg1: i32) -> (i32, i32) {
    %c1_i32 = arith.constant 1 : i32
    %0 = arith.muli %arg0, %c1_i32 : i32
    %1 = arith.addi %0, %arg1 : i32
    %c0_i32 = arith.constant 0 : i32
    %2 = arith.minsi %1, %c0_i32 : i32
    %c0_i32_0 = arith.constant 0 : i32
    %c0_i32_1 = arith.constant 0 : i32
    return %2, %c0_i32_0 : i32, i32
  }
  func.func @transform_2(%arg0: i32, %arg1: i32) -> (i32, i32) {
    %c0_i32 = arith.constant 0 : i32
    %c0_i32_0 = arith.constant 0 : i32
    return %arg0, %c0_i32 : i32, i32
  }
}

</mosaic_0001>

<bundles_post_ra>
// kernel: tpu_custom_call.1
= control target key start
LH: loop header
LB: loop body
LE: loop exit
PB: predicated region body
PF: predicated region fallthrough
CT: control target
= control target key end

     0   :  { %7 = vsyncpa [#allocation3], 0  ;;  %s232_s0 = inlined_call_operand.hbm [shape: f32[16,128], index: 0, kind: input, shape index: {}]   ;;  %s233_s1 = inlined_call_operand.hbm [shape: f32[16,128], index: 1, kind: input, shape index: {}]   ;;  %s234_s2 = inlined_call_operand.hbm [shape: f32[8,128], index: 2, kind: output, shape index: {}]  }
   0x1   :  { %8 = vsyncpa [#allocation6], 0 }
   0x2   :  { %9 = vsyncpa [#allocation4], 0  ;;  %s176_s9 = smov [#allocation2]   ;;  %s104_s13 = scalar_lea.hbm %s232_s0, 256 }
   0x3   :  { %s21_s10 = sshll.u32 %s176_s9, 4  ;;  %p105_p0 = scmp.ne.s32.totalorder %s232_s0, %s104_s13  ;;  %s22_s10 = int_to_ptr.vmem [resolvable:$true] %s21_s10 }
   0x4   :  { %p108_p1 = scmp.lt.u32.totalorder %s104_s13, %s232_s0 }
   0x6   :  { %p110_p2 = pnand %p108_p1, %p105_p0 }
   0x8   :  { %113 = shalt.err (!%p110_p2)
}
   0x9   :  { %s114_s18 = scalar_lea.vmem %s22_s10, 256  ;;  %p119_p4 = scmp.lt.s32.totalorder %s22_s10, %s22_s10 }
   0xa   :  { %p115_p3 = scmp.ne.s32.totalorder %s22_s10, %s114_s18  ;;  %p120_p5 = scmp.lt.s32.totalorder %s114_s18, %s114_s18 }
   0xc   :  { %p121_p6 = por %p120_p5, %p119_p4 }
   0xe   :  { %p122_p7 = pnand %p121_p6, %p115_p3 }
  0x10   :  { %125 = shalt.err (!%p122_p7)
}
  0x11   :  { %s177_s19 = smov 128   ;;  %s178_s20 = smov 8  }
  0x12   :  { %27 = dma.hbm_to_vmem [thread:$0]  %s232_s0, 256, %s22_s10, [#allocation3], %s177_s19, %s177_s19, %s178_s20  }
  0x13   :  { %s179_s23 = smov [#allocation5]   ;;  %s126_s27 = scalar_lea.hbm %s233_s1, 256 }
  0x14   :  { %s39_s24 = sshll.u32 %s179_s23, 4  ;;  %p127_p8 = scmp.ne.s32.totalorder %s233_s1, %s126_s27  ;;  %s40_s24 = int_to_ptr.vmem [resolvable:$true] %s39_s24 }
  0x15   :  { %p130_p9 = scmp.lt.u32.totalorder %s126_s27, %s233_s1 }
  0x17   :  { %p132_p10 = pnand %p130_p9, %p127_p8 }
  0x19   :  { %135 = shalt.err (!%p132_p10)
}
  0x1a   :  { %s136_s4 = scalar_lea.vmem %s40_s24, 256  ;;  %p141_p12 = scmp.lt.s32.totalorder %s40_s24, %s40_s24 }
  0x1b   :  { %p137_p11 = scmp.ne.s32.totalorder %s40_s24, %s136_s4  ;;  %p142_p13 = scmp.lt.s32.totalorder %s136_s4, %s136_s4 }
  0x1d   :  { %p143_p0 = por %p142_p13, %p141_p12 }
  0x1f   :  { %p144_p1 = pnand %p143_p0, %p137_p11 }
  0x21   :  { %147 = shalt.err (!%p144_p1)
}
  0x22   :  { %45 = dma.hbm_to_vmem [thread:$0]  %s233_s1, 256, %s40_s24, [#allocation6], %s177_s19, %s177_s19, %s178_s20  }
  0x23   :  { %170 = dma.done.wait [#allocation3], 256  }
  0x24   :  { %171 = vsyncadd [#allocation3], 4294967040 }
  0x25   :  { %172 = dma.done.wait [#allocation6], 256  }
  0x26   :  { %173 = vsyncadd [#allocation6], 4294967040  ;;  %v66_v0 = vld [vmem:[#allocation2] sm:$0xff]  ;;  %v67_v1 = vld [vmem:[#allocation2 + $0x8] sm:$0xff]  ;;  %s180_s6 = smov [#allocation7]  }
  0x27   :  { %v68_v2 = vld [vmem:[#allocation5] sm:$0xff]  ;;  %v69_v3 = vld [vmem:[#allocation5 + $0x8] sm:$0xff]  ;;  %s84_s7 = sshll.u32 %s180_s6, 4  ;;  %s85_s7 = int_to_ptr.vmem [resolvable:$true] %s84_s7 }
  0x28   :  { %v70_v4 = vsub.f32 %v68_v2, %v66_v0  ;;  %v71_v5 = vsub.f32 %v69_v3, %v67_v1  ;;  %s148_s8 = scalar_lea.vmem %s85_s7, 128  ;;  %p153_p3 = scmp.lt.s32.totalorder %s85_s7, %s85_s7 }
  0x29   :  { %p149_p2 = scmp.ne.s32.totalorder %s85_s7, %s148_s8  ;;  %p154_p4 = scmp.lt.s32.totalorder %s148_s8, %s148_s8 }
  0x2a   :  { %v72_v6 = vmul.f32 %v70_v4, %v70_v4  ;;  %v73_v7 = vmul.f32 %v71_v5, %v71_v5 }
  0x2b   :  { %p155_p5 = por %p154_p4, %p153_p3 }
  0x2c   :  { %v74_v8 = vadd.f32 %v73_v7, %v72_v6 }
  0x2d   :  { %p156_p6 = pnand %p155_p5, %p149_p2 }
  0x2e   :  { %77 = vst [vmem:[#allocation7] sm:$0xff] %v74_v8 }
  0x2f   :  { %159 = shalt.err (!%p156_p6)
}
  0x30   :  { %s160_s10 = scalar_lea.hbm %s234_s2, 128 }
  0x31   :  { %p161_p7 = scmp.ne.s32.totalorder %s234_s2, %s160_s10  ;;  %p164_p8 = scmp.lt.u32.totalorder %s160_s10, %s234_s2 }
  0x33   :  { %p166_p9 = pnand %p164_p8, %p161_p7 }
  0x35   :  { %169 = shalt.err (!%p166_p9)
}
  0x36   :  { %87 = dma.vmem_to_hbm [thread:$0]  %s85_s7, 128, %s234_s2, [#allocation4]  }
  0x37   :  { %174 = dma.done.wait [#allocation4], 128  }
  0x38   :  { %175 = vsyncadd [#allocation4], 4294967168 }
  0x39   :  { %91 = vsyncpa [#allocation3], 1 }
  0x3a   :  { %92 = vsyncpa [#allocation6], 1 }
  0x3b   :  { %93 = vsyncpa [#allocation4], 1 }

</bundles_post_ra>
